<compile_context>
chip_gen: v6e
topology: v6e:2x2x1
jax: 0.10.0
libtpu: 0.0.40
codegen_flags: <defaults>
</compile_context>

<pallas_src>
import functools

import jax
import jax.numpy as jnp
from jax import lax
from jax.experimental import pallas as pl
from jax.experimental.pallas import tpu as pltpu

LANES = 128
SUBLANES = 8
MAX_BLOCK_ROWS = 1024  # 1024x128 f32 = 512 KiB per buffer; 2 in x 2 bufs = 2 MiB VMEM


def _round_up(x: int, m: int) -> int:
    return ((x + m - 1) // m) * m


def _tweedie_partial_kernel(x_ref, t_ref, o_ref, *, p: float):
    k = pl.program_id(1)

    # Output block doubles as the (8, 128) f32 VMEM accumulator: its index_map
    # ignores the reduction axis, so it stays resident across all k steps.
    @pl.when(k == 0)
    def _():
        o_ref[...] = jnp.zeros_like(o_ref)

    x = x_ref[...].astype(jnp.float32)
    t = t_ref[...].astype(jnp.float32)

    if p == 1.5:
        # -t * x^-0.5 / (-0.5) + x^0.5 / 0.5  ==  2 * (t + x) * rsqrt(x)
        loss = 2.0 * (t + x) * lax.rsqrt(x)
    else:
        w = jnp.power(x, 1.0 - p)  # x^(2-p) = x * w; divisions folded to consts
        loss = (-1.0 / (1.0 - p)) * t * w + (1.0 / (2.0 - p)) * x * w

    # Sublane-aligned fold of the (R, 128) block into the (8, 128) accumulator
    # (pure VPU adds; the expensive cross-lane reduce is done once, outside).
    r = loss.shape[0]
    o_ref[...] += loss.reshape(r // SUBLANES, SUBLANES, LANES).sum(axis=0)


def tweedie_loss(inp: jax.Array, target: jax.Array, p: float = 1.5) -> jax.Array:
    """Mean Tweedie loss over all elements (matches TweedieLoss.forward)."""
    assert inp.shape == target.shape
    # TODO(synk): the PyTorch module's runtime asserts (input.min() > 0,
    # target.min() >= 0) are data-dependent and not expressible under jit;
    # strictly-positive input is assumed here as a precondition.
    p = float(p)
    n = inp.size

    x_flat = inp.reshape(-1)
    t_flat = target.reshape(-1)

    # Tiling: lane-dense (rows, 128); block rows as large as sensible.
    row_align = SUBLANES if jnp.dtype(inp.dtype).itemsize >= 4 else 2 * SUBLANES
    rows_needed = pl.cdiv(n, LANES)
    block_rows = min(MAX_BLOCK_ROWS, _round_up(rows_needed, row_align))
    num_par = 2 if rows_needed >= 2 * block_rows else 1  # v7x: shard over 2 TCs
    blocks_per_core = pl.cdiv(rows_needed, num_par * block_rows)
    padded_rows = num_par * blocks_per_core * block_rows
    pad = padded_rows * LANES - n

    if pad:
        # Neutral padding: x=1, t=(1-p)/(2-p) contributes exactly zero loss.
        t_pad = (1.0 - p) / (2.0 - p)
        x_flat = jnp.concatenate([x_flat, jnp.ones((pad,), x_flat.dtype)])
        t_flat = jnp.concatenate([t_flat, jnp.full((pad,), t_pad, t_flat.dtype)])

    x2d = x_flat.reshape(padded_rows, LANES)
    t2d = t_flat.reshape(padded_rows, LANES)

    in_spec = pl.BlockSpec(
        (block_rows, LANES), lambda i, k: (i * blocks_per_core + k, 0)
    )

    partials = pl.pallas_call(
        functools.partial(_tweedie_partial_kernel, p=p),
        out_shape=jax.ShapeDtypeStruct((num_par * SUBLANES, LANES), jnp.float32),
        grid_spec=pltpu.PrefetchScalarGridSpec(
            num_scalar_prefetch=0,
            grid=(num_par, blocks_per_core),
            in_specs=[in_spec, in_spec],
            out_specs=pl.BlockSpec((SUBLANES, LANES), lambda i, k: (i, 0)),
        ),
        compiler_params=pltpu.CompilerParams(
            dimension_semantics=("parallel", "arbitrary"),
        ),
    )(x2d, t2d)

    # Final cross-lane reduce + mean (tiny, done once in XLA).
    return (jnp.sum(partials) / jnp.float32(n)).astype(jnp.float32)


def tweedie_loss_ref(inp, target, p=1.5):
    inp = inp.astype(jnp.float32)
    target = target.astype(jnp.float32)
    loss = (-target * jnp.power(inp, 1.0 - p) / (1.0 - p)
            + jnp.power(inp, 2.0 - p) / (2.0 - p))
    return jnp.mean(loss)


if __name__ == "__main__":
    key = jax.random.PRNGKey(0)
    k1, k2, k3, k4 = jax.random.split(key, 4)

    # NCHW inputs; input strictly positive, target >= 0 (zero-inflated).
    shape = (2, 4, 16, 16)
    inp = jax.random.uniform(k1, shape, dtype=jnp.float32, minval=0.05, maxval=3.0)
    target = jnp.maximum(
        jax.random.uniform(k2, shape, dtype=jnp.float32, minval=-1.0, maxval=2.0), 0.0
    )

    out = jax.block_until_ready(tweedie_loss(inp, target, p=1.5))
    ref = tweedie_loss_ref(inp, target, p=1.5)
    assert jnp.allclose(out, ref, rtol=1e-5, atol=1e-5), (out, ref)

    # Ragged element count (not a multiple of 1024) -> exercises padding path.
    shape2 = (2, 3, 7, 5)
    inp2 = jax.random.uniform(k3, shape2, dtype=jnp.float32, minval=0.05, maxval=3.0)
    target2 = jnp.maximum(
        jax.random.uniform(k4, shape2, dtype=jnp.float32, minval=-1.0, maxval=2.0), 0.0
    )
    out2 = jax.block_until_ready(tweedie_loss(inp2, target2, p=1.5))
    ref2 = tweedie_loss_ref(inp2, target2, p=1.5)
    assert jnp.allclose(out2, ref2, rtol=1e-5, atol=1e-5), (out2, ref2)

    # Non-default p -> exercises the general (single-power) path.
    out3 = jax.block_until_ready(tweedie_loss(inp, target, p=1.3))
    ref3 = tweedie_loss_ref(inp, target, p=1.3)
    assert jnp.allclose(out3, ref3, rtol=1e-5, atol=1e-5), (out3, ref3)

    print("KERNEL_OK")
</pallas_src>

<mosaic_0001>
module attributes {stable_mosaic.version = 11 : i64} {
  func.func @_tweedie_partial_kernel(%arg0: i32, %arg1: i32, %arg2: memref<16x128xf32, #tpu.memory_space<vmem>>, %arg3: memref<16x128xf32, #tpu.memory_space<vmem>>, %arg4: memref<8x128xf32, #tpu.memory_space<vmem>>) attributes {dimension_semantics = [#tpu.dimension_semantics<parallel>, #tpu.dimension_semantics<arbitrary>], iteration_bounds = array<i64: 1, 1>, scalar_prefetch = 0 : i64, scratch_operands = 0 : i64, tpu.core_type = #tpu.core_type<tc>, window_params = [{transform_indices = @transform_0, window_bounds = array<i64: 16, 128>}, {transform_indices = @transform_1, window_bounds = array<i64: 16, 128>}, {transform_indices = @transform_2, window_bounds = array<i64: 8, 128>}]} {
    %c0_i32 = arith.constant 0 : i32
    %0 = arith.cmpi eq, %arg1, %c0_i32 : i32
    %1 = arith.extui %0 : i1 to i32
    %c0_i32_0 = arith.constant 0 : i32
    %2 = arith.cmpi ne, %1, %c0_i32_0 : i32
    scf.if %2 {
      %cst_9 = arith.constant 0.000000e+00 : f32
      %15 = vector.broadcast %cst_9 : f32 to vector<8x128xf32>
      %c0_10 = arith.constant 0 : index
      %c0_11 = arith.constant 0 : index
      %16 = vector.load %arg4[%c0_10, %c0_11] : memref<8x128xf32, #tpu.memory_space<vmem>>, vector<8x128xf32>
      tpu.vector_store %arg4[%c0_10, %c0_11], %15 {strides = array<i32>} : memref<8x128xf32, #tpu.memory_space<vmem>>, vector<8x128xf32>,
    } else {
    }
    %c0 = arith.constant 0 : index
    %c0_1 = arith.constant 0 : index
    %3 = vector.load %arg2[%c0, %c0_1] : memref<16x128xf32, #tpu.memory_space<vmem>>, vector<16x128xf32>
    %c0_2 = arith.constant 0 : index
    %c0_3 = arith.constant 0 : index
    %4 = vector.load %arg3[%c0_2, %c0_3] : memref<16x128xf32, #tpu.memory_space<vmem>>, vector<16x128xf32>
    %5 = arith.addf %4, %3 : vector<16x128xf32>
    %cst = arith.constant 2.000000e+00 : f32
    %6 = vector.broadcast %cst : f32 to vector<16x128xf32>
    %7 = arith.mulf %6, %5 : vector<16x128xf32>
    %8 = math.rsqrt %3 : vector<16x128xf32>
    %9 = arith.mulf %7, %8 : vector<16x128xf32>
    %c0_4 = arith.constant 0 : index
    %c0_5 = arith.constant 0 : index
    %10 = vector.load %arg4[%c0_4, %c0_5] : memref<8x128xf32, #tpu.memory_space<vmem>>, vector<8x128xf32>
    %11 = vector.shape_cast %9 : vector<16x128xf32> to vector<2x8x128xf32>
    %cst_6 = arith.constant dense<0.000000e+00> : vector<8x128xf32>
    %12 = vector.multi_reduction <add>, %11, %cst_6 [0] : vector<2x8x128xf32> to vector<8x128xf32>
    %13 = arith.addf %10, %12 : vector<8x128xf32>
    %c0_7 = arith.constant 0 : index
    %c0_8 = arith.constant 0 : index
    %14 = vector.load %arg4[%c0_7, %c0_8] : memref<8x128xf32, #tpu.memory_space<vmem>>, vector<8x128xf32>
    tpu.vector_store %arg4[%c0_7, %c0_8], %13 {strides = array<i32>} : memref<8x128xf32, #tpu.memory_space<vmem>>, vector<8x128xf32>,
    return
  }
  func.func @transform_0(%arg0: i32, %arg1: i32) -> (i32, i32) {
    %c1_i32 = arith.constant 1 : i32
    %0 = arith.muli %arg0, %c1_i32 : i32
    %1 = arith.addi %0, %arg1 : i32
    %c0_i32 = arith.constant 0 : i32
    %c0_i32_0 = arith.constant 0 : i32
    return %1, %c0_i32 : i32, i32
  }
  func.func @transform_1(%arg0: i32, %arg1: i32) -> (i32, i32) {
    %c1_i32 = arith.constant 1 : i32
    %0 = arith.muli %arg0, %c1_i32 : i32
    %1 = arith.addi %0, %arg1 : i32
    %c0_i32 = arith.constant 0 : i32
    %c0_i32_0 = arith.constant 0 : i32
    return %1, %c0_i32 : i32, i32
  }
  func.func @transform_2(%arg0: i32, %arg1: i32) -> (i32, i32) {
    %c0_i32 = arith.constant 0 : i32
    %c0_i32_0 = arith.constant 0 : i32
    return %arg0, %c0_i32 : i32, i32
  }
}

</mosaic_0001>

<bundles_post_ra>
// kernel: tpu_custom_call.1
= control target key start
LH: loop header
LB: loop body
LE: loop exit
PB: predicated region body
PF: predicated region fallthrough
CT: control target
= control target key end

     0   :  { %7 = vsyncpa [#allocation3], 0  ;;  %s194_s0 = inlined_call_operand.hbm [shape: f32[16,128], index: 0, kind: input, shape index: {}]   ;;  %s195_s1 = inlined_call_operand.hbm [shape: f32[16,128], index: 1, kind: input, shape index: {}]   ;;  %s196_s2 = inlined_call_operand.hbm [shape: f32[8,128], index: 2, kind: output, shape index: {}]  }
   0x1   :  { %8 = vsyncpa [#allocation6], 0 }
   0x2   :  { %9 = vsyncpa [#allocation4], 0  ;;  %s165_s9 = smov [#allocation2]  }
   0x3   :  { %s19_s10 = sshll.u32 %s165_s9, 4  ;;  %s20_s10 = int_to_ptr.vmem [resolvable:$true] %s19_s10 }
   0x4   :  { %s107_s11 = scalar_lea.vmem %s20_s10, 256  ;;  %p112_p1 = scmp.lt.s32.totalorder %s20_s10, %s20_s10 }
   0x5   :  { %p108_p0 = scmp.ne.s32.totalorder %s20_s10, %s107_s11  ;;  %p113_p2 = scmp.lt.s32.totalorder %s107_s11, %s107_s11 }
   0x7   :  { %p114_p3 = por %p113_p2, %p112_p1 }
   0x9   :  { %p115_p4 = pnand %p114_p3, %p108_p0 }
   0xb   :  { %118 = shalt.err (!%p115_p4)
}
   0xc   :  { %s166_s12 = smov 128   ;;  %s167_s13 = smov 8  }
   0xd   :  { %25 = dma.hbm_to_vmem [thread:$0]  %s194_s0, 256, %s20_s10, [#allocation3], %s166_s12, %s166_s12, %s167_s13  }
   0xe   :  { %s168_s16 = smov [#allocation5]  }
   0xf   :  { %s35_s17 = sshll.u32 %s168_s16, 4  ;;  %s36_s17 = int_to_ptr.vmem [resolvable:$true] %s35_s17 }
  0x10   :  { %s127_s18 = scalar_lea.vmem %s36_s17, 256  ;;  %p132_p6 = scmp.lt.s32.totalorder %s36_s17, %s36_s17 }
  0x11   :  { %p128_p5 = scmp.ne.s32.totalorder %s36_s17, %s127_s18  ;;  %p133_p7 = scmp.lt.s32.totalorder %s127_s18, %s127_s18 }
  0x13   :  { %p134_p8 = por %p133_p7, %p132_p6 }
  0x15   :  { %p135_p9 = pnand %p134_p8, %p128_p5 }
  0x17   :  { %138 = shalt.err (!%p135_p9)
}
  0x18   :  { %41 = dma.hbm_to_vmem [thread:$0]  %s195_s1, 256, %s36_s17, [#allocation6], %s166_s12, %s166_s12, %s167_s13  }
  0x19   :  { %159 = dma.done.wait [#allocation3], 256  }
  0x1a   :  { %160 = vsyncadd [#allocation3], 4294967040 }
  0x1b   :  { %161 = dma.done.wait [#allocation6], 256  }
  0x1c   :  { %162 = vsyncadd [#allocation6], 4294967040  ;;  %v57_v0 = vld [vmem:[#allocation2] sm:$0xff]  ;;  %v58_v1 = vld [vmem:[#allocation2 + $0x8] sm:$0xff]  ;;  %s169_s0 = smov [#allocation7]  }
  0x1d   :  { %95 = vrsqrt.f32 %v57_v0  ;;  %v59_v2 = vld [vmem:[#allocation5] sm:$0xff]  ;;  %v60_v3 = vld [vmem:[#allocation5 + $0x8] sm:$0xff]  ;;  %s79_s1 = sshll.u32 %s169_s0, 4  ;;  %s80_s1 = int_to_ptr.vmem [resolvable:$true] %s79_s1 }
  0x1e   :  { %97 = vrsqrt.f32 %v58_v1  ;;  %v61_v4 = vadd.f32 %v59_v2, %v57_v0  ;;  %v62_v5 = vadd.f32 %v60_v3, %v58_v1  ;;  %s139_s21 = scalar_lea.vmem %s80_s1, 128  ;;  %p144_p11 = scmp.lt.s32.totalorder %s80_s1, %s80_s1 }
  0x1f   :  { %p140_p10 = scmp.ne.s32.totalorder %s80_s1, %s139_s21  ;;  %p145_p12 = scmp.lt.s32.totalorder %s139_s21, %s139_s21 }
  0x20   :  { %v63_v6 = vmul.f32 2.0, %v61_v4  ;;  %v64_v7 = vmul.f32 2.0, %v62_v5 }
  0x21   :  { %p146_p13 = por %p145_p12, %p144_p11 }
  0x23   :  { %p147_p0 = pnand %p146_p13, %p140_p10 }
  0x2a   :  { %v96_v8 = vpop.eup %95 }
  0x2b   :  { %v98_v9 = vpop.eup %97  ;;  %v67_v10 = vmul.f32 %v96_v8, %v63_v6 }
  0x2c   :  { %v68_v11 = vmul.f32 %v98_v9, %v64_v7 }
  0x2e   :  { %v70_v12 = vadd.f32 %v68_v11, %v67_v10 }
  0x30   :  { %72 = vst [vmem:[#allocation7] sm:$0xff] %v70_v12 }
  0x31   :  { %150 = shalt.err (!%p147_p0)
}
  0x32   :  { %82 = dma.vmem_to_hbm [thread:$0]  %s80_s1, 128, %s196_s2, [#allocation4]  }
  0x33   :  { %163 = dma.done.wait [#allocation4], 128  }
  0x34   :  { %164 = vsyncadd [#allocation4], 4294967168 }
  0x35   :  { %86 = vsyncpa [#allocation3], 1 }
  0x36   :  { %87 = vsyncpa [#allocation6], 1 }
  0x37   :  { %88 = vsyncpa [#allocation4], 1 }

</bundles_post_ra>
